<compile_context>
chip_gen: v6e
topology: v6e:2x2x1
jax: 0.10.0
libtpu: 0.0.40
codegen_flags: <defaults>
</compile_context>

<pallas_src>
import functools

import jax
import jax.numpy as jnp
from jax.experimental import pallas as pl
from jax.experimental.pallas import tpu as pltpu


def _round_up(a, m):
    return (a + m - 1) // m * m


def encoder_kernel(*refs, conditional, num_labels_pad):
    """Fused MLP: (Linear+ReLU) x2, then one fused (lane-padded) head matmul."""
    if conditional:
        (x_ref, cond_ref, w0x_ref, w0l_ref, b0_ref,
         w1_ref, b1_ref, wh_ref, bh_ref, out_ref) = refs
    else:
        (x_ref, w0x_ref, b0_ref,
         w1_ref, b1_ref, wh_ref, bh_ref, out_ref) = refs

    x = x_ref[...]  # (tile_b, in_feat) bf16

    # Layer 0: x @ W0_x (+ one_hot(cond) @ W0_label) + b0, ReLU.  f32 acc.
    h = jnp.dot(x, w0x_ref[...], preferred_element_type=jnp.float32)
    if conditional:
        cond = cond_ref[...]  # (tile_b, 1) int32
        lbl = jax.lax.broadcasted_iota(
            jnp.int32, (x.shape[0], num_labels_pad), 1)
        onehot = (lbl == cond).astype(w0l_ref.dtype)  # (tile_b, nl_pad) bf16
        h = h + jnp.dot(onehot, w0l_ref[...],
                        preferred_element_type=jnp.float32)
    h = jnp.maximum(h + b0_ref[...], 0.0)

    # Layer 1: Linear + ReLU (bf16 operands, f32 accumulation).
    h = jnp.maximum(
        jnp.dot(h.astype(w1_ref.dtype), w1_ref[...],
                preferred_element_type=jnp.float32) + b1_ref[...],
        0.0)

    # Fused heads: one matmul producing [means | log_vars | 0-pad] (128 lanes).
    out_ref[...] = (
        jnp.dot(h.astype(wh_ref.dtype), wh_ref[...],
                preferred_element_type=jnp.float32) + bh_ref[...])


def encoder_forward(x, params, *, conditional, num_labels, cond=None):
    """JAX wrapper reproducing Encoder.forward semantics."""
    (w0, b0), (w1, b1), (wm, bm), (wv, bv) = params
    batch, in_feat = x.shape
    h0 = w0.shape[1]
    h1 = w1.shape[1]
    latent = wm.shape[1]

    out_width = 2 * latent
    out_pad = _round_up(out_width, 128)   # lane-dense stores (unmasked vst)

    # Fused, lane-padded head weights / biases:  [wm | wv | 0 ...]
    w_head = jnp.concatenate([wm, wv], axis=-1)
    w_head = jnp.pad(w_head, ((0, 0), (0, out_pad - out_width)))
    b_head = jnp.concatenate([bm, bv], axis=-1)
    b_head = jnp.pad(b_head, ((0, 0), (0, out_pad - out_width)))

    # bf16 operand storage; accumulation stays f32 inside the kernel.
    x_bf = x.astype(jnp.bfloat16)
    w1_bf = w1.astype(jnp.bfloat16)
    wh_bf = w_head.astype(jnp.bfloat16)

    # Conditional path: one_hot(cond) @ W0_label is computed in-kernel from a
    # streamed (tile_b, 1) int32 label block against a VMEM-resident label
    # table; the label dim is padded to 16 rows for bf16 sublane packing.
    # The eager label-range check of the PyTorch reference is dropped
    # (device->host sync, jit-incompatible).
    # TODO(synk): optional debug-mode label-range validation via checkify.
    if conditional:
        if cond is None:
            raise ValueError("conditional=True requires cond labels")
        nl_pad = _round_up(num_labels, 16)
        w0_x = w0[:in_feat]                                  # (in_feat, h0)
        w0_label = jnp.pad(w0[in_feat:],
                           ((0, nl_pad - num_labels), (0, 0)))  # (nl_pad, h0)
        w0l_bf = w0_label.astype(jnp.bfloat16)
    else:
        nl_pad = 0
        w0_x = w0
        w0l_bf = None
    w0x_bf = w0_x.astype(jnp.bfloat16)

    # Batch tiling: weights stay VMEM-resident across the grid, activations
    # stream per tile.  Tile cap 2048 (per-tile working set << VMEM on all
    # generations); large batches get >= 2 tiles so v7x's two TensorCores can
    # both run ("parallel" axis).  Batch is zero-padded to a tile multiple.
    tile_b = min(2048, max(16, _round_up(pl.cdiv(batch, 2), 16)))
    padded_batch = _round_up(batch, tile_b)
    grid = (padded_batch // tile_b,)

    x_p = jnp.pad(x_bf, ((0, padded_batch - batch), (0, 0)))

    in_specs = [pl.BlockSpec((tile_b, in_feat), lambda i: (i, 0))]   # x
    operands = [x_p]
    if conditional:
        cond_p = jnp.pad(cond.astype(jnp.int32).reshape(batch, 1),
                         ((0, padded_batch - batch), (0, 0)))
        in_specs.append(pl.BlockSpec((tile_b, 1), lambda i: (i, 0)))  # cond
        operands.append(cond_p)
    in_specs.append(pl.BlockSpec((in_feat, h0), lambda i: (0, 0)))    # w0_x
    operands.append(w0x_bf)
    if conditional:
        in_specs.append(pl.BlockSpec((nl_pad, h0), lambda i: (0, 0)))  # w0_lbl
        operands.append(w0l_bf)
    in_specs += [
        pl.BlockSpec((1, h0), lambda i: (0, 0)),                      # b0
        pl.BlockSpec((h0, h1), lambda i: (0, 0)),                     # w1
        pl.BlockSpec((1, h1), lambda i: (0, 0)),                      # b1
        pl.BlockSpec((h1, out_pad), lambda i: (0, 0)),                # w_head
        pl.BlockSpec((1, out_pad), lambda i: (0, 0)),                 # b_head
    ]
    operands += [b0, w1_bf, b1, wh_bf, b_head]

    flops = 2 * padded_batch * (in_feat * h0 + nl_pad * h0
                                + h0 * h1 + h1 * out_pad)
    bytes_accessed = (
        2 * (x_p.size + w0x_bf.size + w1_bf.size + wh_bf.size
             + (w0l_bf.size if conditional else 0))
        + 4 * (b0.size + b1.size + b_head.size
               + (padded_batch if conditional else 0))
        + 4 * padded_batch * out_pad)

    out = pl.pallas_call(
        functools.partial(encoder_kernel,
                          conditional=conditional, num_labels_pad=nl_pad),
        out_shape=jax.ShapeDtypeStruct((padded_batch, out_pad), jnp.float32),
        grid=grid,
        in_specs=in_specs,
        out_specs=pl.BlockSpec((tile_b, out_pad), lambda i: (i, 0)),
        compiler_params=pltpu.CompilerParams(
            dimension_semantics=("parallel",)),
        cost_estimate=pl.CostEstimate(
            flops=flops, transcendentals=0, bytes_accessed=bytes_accessed),
    )(*operands)

    means = out[:batch, :latent]
    log_vars = out[:batch, latent:out_width]
    return means, log_vars


def make_params(key, layer_sizes, latent_size):
    """Deterministic synthetic init (PyTorch-style uniform bounds)."""
    params = []
    dims = list(zip(layer_sizes[:-1], layer_sizes[1:]))
    dims += [(layer_sizes[-1], latent_size), (layer_sizes[-1], latent_size)]
    for (fan_in, fan_out) in dims:
        key, kw, kb = jax.random.split(key, 3)
        bound = 1.0 / jnp.sqrt(fan_in)
        w = jax.random.uniform(kw, (fan_in, fan_out), jnp.float32, -bound, bound)
        b = jax.random.uniform(kb, (1, fan_out), jnp.float32, -bound, bound)
        params.append((w, b))
    return params


def reference_forward(x, params, *, conditional, num_labels, cond=None):
    """Plain-JAX reference matching the PyTorch module (one-hot + concat)."""
    if conditional:
        onehot = jax.nn.one_hot(cond, num_labels, dtype=x.dtype)
        x = jnp.concatenate([x, onehot], axis=-1)
    (w0, b0), (w1, b1), (wm, bm), (wv, bv) = params
    h = jnp.maximum(x @ w0 + b0, 0.0)
    h = jnp.maximum(h @ w1 + b1, 0.0)
    return h @ wm + bm, h @ wv + bv


if __name__ == "__main__":
    # Small CVAE config: flattened "image" of 32 features, 2 hidden layers,
    # latent 16, 10 class labels, conditional=True.
    batch = 8
    base_layer_sizes = [32, 64, 32]
    latent_size = 16
    num_labels = 10
    conditional = True

    layer_sizes = list(base_layer_sizes)
    if conditional:
        layer_sizes[0] += num_labels  # same mutation as the PyTorch __init__

    key = jax.random.PRNGKey(0)
    key, kx, kc, kp = jax.random.split(key, 4)
    x = jax.random.normal(kx, (batch, base_layer_sizes[0]), jnp.float32)
    cond = jax.random.randint(kc, (batch,), 0, num_labels)
    params = make_params(kp, layer_sizes, latent_size)

    means, log_vars = encoder_forward(
        x, params, conditional=conditional, num_labels=num_labels, cond=cond
    )
    jax.block_until_ready((means, log_vars))

    # Reference with the same bf16-rounded operands (kernel stores x/weights
    # in bf16 with f32 accumulation); tolerance covers the kernel's bf16
    # intermediate-activation casts.
    def bf16_round(a):
        return a.astype(jnp.bfloat16).astype(jnp.float32)

    ref_params = [(bf16_round(w), b) for (w, b) in params]
    ref_means, ref_log_vars = reference_forward(
        bf16_round(x), ref_params,
        conditional=conditional, num_labels=num_labels, cond=cond)

    assert jnp.allclose(means, ref_means, atol=3e-2, rtol=3e-2)
    assert jnp.allclose(log_vars, ref_log_vars, atol=3e-2, rtol=3e-2)
    assert means.shape == (batch, latent_size)
    assert log_vars.shape == (batch, latent_size)

    print("KERNEL_OK")
</pallas_src>

<mosaic_0001>
module attributes {stable_mosaic.version = 11 : i64} {
  func.func @encoder_kernel(%arg0: i32, %arg1: memref<16x32xbf16, #tpu.memory_space<vmem>>, %arg2: memref<16x1xi32, #tpu.memory_space<vmem>>, %arg3: memref<32x64xbf16, #tpu.memory_space<vmem>>, %arg4: memref<16x64xbf16, #tpu.memory_space<vmem>>, %arg5: memref<1x64xf32, #tpu.memory_space<vmem>>, %arg6: memref<64x32xbf16, #tpu.memory_space<vmem>>, %arg7: memref<1x32xf32, #tpu.memory_space<vmem>>, %arg8: memref<32x128xbf16, #tpu.memory_space<vmem>>, %arg9: memref<1x128xf32, #tpu.memory_space<vmem>>, %arg10: memref<16x128xf32, #tpu.memory_space<vmem>>) attributes {dimension_semantics = [#tpu.dimension_semantics<parallel>], iteration_bounds = array<i64: 1>, scalar_prefetch = 0 : i64, scratch_operands = 0 : i64, tpu.core_type = #tpu.core_type<tc>, window_params = [{transform_indices = @transform_0, window_bounds = array<i64: 16, 32>}, {transform_indices = @transform_1, window_bounds = array<i64: 16, 1>}, {pipeline_mode = #tpu.pipeline_mode<synchronous>, transform_indices = @transform_2, window_bounds = array<i64: 32, 64>}, {pipeline_mode = #tpu.pipeline_mode<synchronous>, transform_indices = @transform_3, window_bounds = array<i64: 16, 64>}, {pipeline_mode = #tpu.pipeline_mode<synchronous>, transform_indices = @transform_4, window_bounds = array<i64: 1, 64>}, {pipeline_mode = #tpu.pipeline_mode<synchronous>, transform_indices = @transform_5, window_bounds = array<i64: 64, 32>}, {pipeline_mode = #tpu.pipeline_mode<synchronous>, transform_indices = @transform_6, window_bounds = array<i64: 1, 32>}, {pipeline_mode = #tpu.pipeline_mode<synchronous>, transform_indices = @transform_7, window_bounds = array<i64: 32, 128>}, {pipeline_mode = #tpu.pipeline_mode<synchronous>, transform_indices = @transform_8, window_bounds = array<i64: 1, 128>}, {transform_indices = @transform_9, window_bounds = array<i64: 16, 128>}]} {
    %c0 = arith.constant 0 : index
    %c0_0 = arith.constant 0 : index
    %0 = vector.load %arg1[%c0, %c0_0] : memref<16x32xbf16, #tpu.memory_space<vmem>>, vector<16x32xbf16>
    %c0_1 = arith.constant 0 : index
    %c0_2 = arith.constant 0 : index
    %1 = vector.load %arg3[%c0_1, %c0_2] : memref<32x64xbf16, #tpu.memory_space<vmem>>, vector<32x64xbf16>
    %cst = arith.constant dense<0.000000e+00> : vector<16x64xf32>
    %2 = tpu.matmul %0, %1, %cst {dimension_numbers = #tpu.dot_dimension_numbers<[1], [0], [0], [1], [0, 0, 1, 1], [], []>} : vector<16x32xbf16>, vector<32x64xbf16>, vector<16x64xf32> -> vector<16x64xf32>
    %c0_3 = arith.constant 0 : index
    %c0_4 = arith.constant 0 : index
    %3 = vector.load %arg2[%c0_3, %c0_4] : memref<16x1xi32, #tpu.memory_space<vmem>>, vector<16x1xi32>
    %4 = tpu.iota {dimensions = array<i32: 1>} : vector<16x16xi32>
    %5 = vector.broadcast %3 : vector<16x1xi32> to vector<16x16xi32>
    %6 = arith.cmpi eq, %4, %5 : vector<16x16xi32>
    %7 = arith.extui %6 : vector<16x16xi1> to vector<16x16xi32>
    %8 = arith.sitofp %7 : vector<16x16xi32> to vector<16x16xf32>
    %9 = arith.truncf %8 : vector<16x16xf32> to vector<16x16xbf16>
    %c0_5 = arith.constant 0 : index
    %c0_6 = arith.constant 0 : index
    %10 = vector.load %arg4[%c0_5, %c0_6] : memref<16x64xbf16, #tpu.memory_space<vmem>>, vector<16x64xbf16>
    %cst_7 = arith.constant dense<0.000000e+00> : vector<16x64xf32>
    %11 = tpu.matmul %9, %10, %cst_7 {dimension_numbers = #tpu.dot_dimension_numbers<[1], [0], [0], [1], [0, 0, 1, 1], [], []>} : vector<16x16xbf16>, vector<16x64xbf16>, vector<16x64xf32> -> vector<16x64xf32>
    %12 = arith.addf %2, %11 : vector<16x64xf32>
    %c0_8 = arith.constant 0 : index
    %c0_9 = arith.constant 0 : index
    %13 = vector.load %arg5[%c0_8, %c0_9] : memref<1x64xf32, #tpu.memory_space<vmem>>, vector<1x64xf32>
    %14 = vector.broadcast %13 : vector<1x64xf32> to vector<16x64xf32>
    %15 = arith.addf %12, %14 : vector<16x64xf32>
    %cst_10 = arith.constant 0.000000e+00 : f32
    %16 = vector.broadcast %cst_10 : f32 to vector<16x64xf32>
    %17 = arith.maximumf %15, %16 : vector<16x64xf32>
    %18 = arith.truncf %17 : vector<16x64xf32> to vector<16x64xbf16>
    %c0_11 = arith.constant 0 : index
    %c0_12 = arith.constant 0 : index
    %19 = vector.load %arg6[%c0_11, %c0_12] : memref<64x32xbf16, #tpu.memory_space<vmem>>, vector<64x32xbf16>
    %cst_13 = arith.constant dense<0.000000e+00> : vector<16x32xf32>
    %20 = tpu.matmul %18, %19, %cst_13 {dimension_numbers = #tpu.dot_dimension_numbers<[1], [0], [0], [1], [0, 0, 1, 1], [], []>} : vector<16x64xbf16>, vector<64x32xbf16>, vector<16x32xf32> -> vector<16x32xf32>
    %c0_14 = arith.constant 0 : index
    %c0_15 = arith.constant 0 : index
    %21 = vector.load %arg7[%c0_14, %c0_15] : memref<1x32xf32, #tpu.memory_space<vmem>>, vector<1x32xf32>
    %22 = vector.broadcast %21 : vector<1x32xf32> to vector<16x32xf32>
    %23 = arith.addf %20, %22 : vector<16x32xf32>
    %cst_16 = arith.constant 0.000000e+00 : f32
    %24 = vector.broadcast %cst_16 : f32 to vector<16x32xf32>
    %25 = arith.maximumf %23, %24 : vector<16x32xf32>
    %26 = arith.truncf %25 : vector<16x32xf32> to vector<16x32xbf16>
    %c0_17 = arith.constant 0 : index
    %c0_18 = arith.constant 0 : index
    %27 = vector.load %arg8[%c0_17, %c0_18] : memref<32x128xbf16, #tpu.memory_space<vmem>>, vector<32x128xbf16>
    %cst_19 = arith.constant dense<0.000000e+00> : vector<16x128xf32>
    %28 = tpu.matmul %26, %27, %cst_19 {dimension_numbers = #tpu.dot_dimension_numbers<[1], [0], [0], [1], [0, 0, 1, 1], [], []>} : vector<16x32xbf16>, vector<32x128xbf16>, vector<16x128xf32> -> vector<16x128xf32>
    %c0_20 = arith.constant 0 : index
    %c0_21 = arith.constant 0 : index
    %29 = vector.load %arg9[%c0_20, %c0_21] : memref<1x128xf32, #tpu.memory_space<vmem>>, vector<1x128xf32>
    %30 = vector.broadcast %29 : vector<1x128xf32> to vector<16x128xf32>
    %31 = arith.addf %28, %30 : vector<16x128xf32>
    %c0_22 = arith.constant 0 : index
    %c0_23 = arith.constant 0 : index
    %32 = vector.load %arg10[%c0_22, %c0_23] : memref<16x128xf32, #tpu.memory_space<vmem>>, vector<16x128xf32>
    tpu.vector_store %arg10[%c0_22, %c0_23], %31 {strides = array<i32>} : memref<16x128xf32, #tpu.memory_space<vmem>>, vector<16x128xf32>,
    return
  }
  func.func @transform_0(%arg0: i32) -> (i32, i32) {
    %c0_i32 = arith.constant 0 : i32
    %c0_i32_0 = arith.constant 0 : i32
    return %arg0, %c0_i32 : i32, i32
  }
  func.func @transform_1(%arg0: i32) -> (i32, i32) {
    %c0_i32 = arith.constant 0 : i32
    %c0_i32_0 = arith.constant 0 : i32
    return %arg0, %c0_i32 : i32, i32
  }
  func.func @transform_2(%arg0: i32) -> (i32, i32) {
    %c0_i32 = arith.constant 0 : i32
    %c0_i32_0 = arith.constant 0 : i32
    %c0_i32_1 = arith.constant 0 : i32
    return %c0_i32, %c0_i32_0 : i32, i32
  }
  func.func @transform_3(%arg0: i32) -> (i32, i32) {
    %c0_i32 = arith.constant 0 : i32
    %c0_i32_0 = arith.constant 0 : i32
    %c0_i32_1 = arith.constant 0 : i32
    return %c0_i32, %c0_i32_0 : i32, i32
  }
  func.func @transform_4(%arg0: i32) -> (i32, i32) {
    %c0_i32 = arith.constant 0 : i32
    %c0_i32_0 = arith.constant 0 : i32
    %c0_i32_1 = arith.constant 0 : i32
    return %c0_i32, %c0_i32_0 : i32, i32
  }
  func.func @transform_5(%arg0: i32) -> (i32, i32) {
    %c0_i32 = arith.constant 0 : i32
    %c0_i32_0 = arith.constant 0 : i32
    %c0_i32_1 = arith.constant 0 : i32
    return %c0_i32, %c0_i32_0 : i32, i32
  }
  func.func @transform_6(%arg0: i32) -> (i32, i32) {
    %c0_i32 = arith.constant 0 : i32
    %c0_i32_0 = arith.constant 0 : i32
    %c0_i32_1 = arith.constant 0 : i32
    return %c0_i32, %c0_i32_0 : i32, i32
  }
  func.func @transform_7(%arg0: i32) -> (i32, i32) {
    %c0_i32 = arith.constant 0 : i32
    %c0_i32_0 = arith.constant 0 : i32
    %c0_i32_1 = arith.constant 0 : i32
    return %c0_i32, %c0_i32_0 : i32, i32
  }
  func.func @transform_8(%arg0: i32) -> (i32, i32) {
    %c0_i32 = arith.constant 0 : i32
    %c0_i32_0 = arith.constant 0 : i32
    %c0_i32_1 = arith.constant 0 : i32
    return %c0_i32, %c0_i32_0 : i32, i32
  }
  func.func @transform_9(%arg0: i32) -> (i32, i32) {
    %c0_i32 = arith.constant 0 : i32
    %c0_i32_0 = arith.constant 0 : i32
    return %arg0, %c0_i32 : i32, i32
  }
}

</mosaic_0001>

<bundles_post_ra>
// kernel: tpu_custom_call.1
= control target key start
LH: loop header
LB: loop body
LE: loop exit
PB: predicated region body
PF: predicated region fallthrough
CT: control target
= control target key end

     0   :  { %v461_v1 = vmov 0   ;;  %v462_v2 = vmov 0.0   ;;  %vm463_vm0 = vmmov 0   ;;  %vm127_vm1 = vcmask 261120   ;;  %s586_s0 = inlined_call_operand.vmem [shape: bf16[16,32], index: 0, kind: input, shape index: {}]   ;;  %s587_s1 = inlined_call_operand.vmem [shape: s32[16,1], index: 1, kind: input, shape index: {}]   ;;  %s588_s2 = inlined_call_operand.vmem [shape: bf16[32,64], index: 2, kind: input, shape index: {}]   ;;  %s589_s3 = inlined_call_operand.vmem [shape: bf16[16,64], index: 3, kind: input, shape index: {}]   ;;  %s590_s4 = inlined_call_operand.vmem [shape: f32[1,64], index: 4, kind: input, shape index: {}]   ;;  %s591_s5 = inlined_call_operand.vmem [shape: bf16[64,32], index: 5, kind: input, shape index: {}]   ;;  %s592_s6 = inlined_call_operand.vmem [shape: f32[1,32], index: 6, kind: input, shape index: {}]   ;;  %s593_s7 = inlined_call_operand.vmem [shape: bf16[32,128], index: 7, kind: input, shape index: {}]   ;;  %s594_s8 = inlined_call_operand.vmem [shape: f32[1,128], index: 8, kind: input, shape index: {}]   ;;  %s595_s9 = inlined_call_operand.hbm [shape: f32[16,128], index: 9, kind: output, shape index: {}]  }
   0x1   :  { %v40_v0 = vld [vmem:[%s587_s1] sm:$0xff]  ;;  %428 = vset.pattern.permute.xlu0 %v461_v1  ;;  %394 = vmatprep.subr.bf16.mxu1 %v462_v2  ;;  %v429_v3 = vld [vmem:[%s588_s2 + $0x8] sm:$0xff]  }
   0x2   :  { %45 = vperm.xlu0 %428, %v40_v0   ;;  %v41_v4 = vld [vmem:[%s587_s1 + $0x8] sm:$0xff]  ;;  %398 = vmatprep.mubr.msk.bf16.mxu1 %vm463_vm0, %v462_v2  ;;  %v430_v5 = vld [vmem:[%s588_s2] sm:$0xff]  }
   0x3   :  { %395 = vmatpush3.bf16.msra.mxu1 %v429_v3  ;;  %388 = vmatprep.subr.bf16.mxu0 %v462_v2  ;;  %v431_v6 = vld [vmem:[%s586_s0] sm:$0xff]  }
   0x4   :  { %396 = vmatprep.subr.bf16.mxu1 %v462_v2  ;;  %v432_v7 = vld [vmem:[%s589_s3] sm:$0xff]   ;;  %390 = vmatprep.mubr.msk.bf16.mxu0 %vm463_vm0, %v462_v2 }
   0x5   :  { %389 = vmatpush3.bf16.msra.mxu0 %v432_v7 }
   0x6   :  { %48 = vperm.xlu0 %428, %v41_v4   ;;  %402 = vmatprep.subr.bf16.mxu0 %v462_v2 }
   0x7   :  { %397 = vmatpush3.bf16.msra.mxu1 %v430_v5 }
   0x8   :  { %414 = vmatprep.subr.bf16.mxu1 %v462_v2 }
   0x9   :  { %14 = vsyncpa [#allocation3], 0  ;;  %v42_v8 = vlaneseq  ;;  %vm65_vm4 = vcmask 130048   ;;  %v433_v14 = vld [vmem:[%s591_s5 + $0x18] sm:$0xff]   ;;  %v434_v16 = vld [vmem:[%s591_s5 + $0x10] sm:$0xff]   ;;  %vm223_vm5 = vcmask 523264  }
   0xa   :  { %399 = vmatmul.mubr.msk.bf16.vlgmr.msra.gmra.mxu1 %vm127_vm1, %v431_v6  ;;  %v435_v18 = vld [vmem:[%s591_s5 + $0x8] sm:$0xff]   ;;  %v436_v21 = vld [vmem:[%s591_s5] sm:$0xff]  }
   0xb   :  { %418 = vmatprep.mubr.msk.bf16.mxu1 %vm463_vm0, %v462_v2  ;;  %v43_v9 = vand.u32 127, %v42_v8  ;;  %v364_v25 = vld [vmem:[%s590_s4] ss:$0 sm:$0xff]  ;;  %v437_v35 = vld [vmem:[%s593_s7 + $0x8] sm:$0xff]  }
   0xc   :  { %415 = vmatpush3.bf16.msra.mxu1 %v437_v35  ;;  %v438_v36 = vld [vmem:[%s593_s7] sm:$0xff]   ;;  %s464_s7 = smov [#allocation2]  }
   0xd   :  { %416 = vmatprep.subr.bf16.mxu1 %v462_v2  ;;  %v365_v37 = vld [vmem:[%s592_s6] ss:$0 sm:$0xff]  ;;  %s345_s12 = sshll.u32 %s464_s7, 4  ;;  %s346_s12 = int_to_ptr.vmem [resolvable:$true] %s345_s12 }
   0xe   :  { %v371_v47 = vld [vmem:[%s594_s8] ss:$0 sm:$0xff]  ;;  %s439_s6 = scalar_lea.vmem %s346_s12, 256  ;;  %p444_p1 = scmp.lt.s32.totalorder %s346_s12, %s346_s12 }
   0xf   :  { %p440_p0 = scmp.ne.s32.totalorder %s346_s12, %s439_s6  ;;  %p445_p2 = scmp.lt.s32.totalorder %s439_s6, %s439_s6 }
  0x10   :  { %417 = vmatpush3.bf16.msra.mxu1 %v438_v36 }
  0x11   :  { %p446_p3 = por %p445_p2, %p444_p1 }
  0x13   :  { %p447_p4 = pnand %p446_p3, %p440_p0 }
  0x7d   :  { %v46_v10 = vpop.permute.xlu0 %45 }
  0x7e   :  { %vm50_vm2 = vcmp.eq.s32.totalorder %v43_v9, %v46_v10 }
  0x7f   :  { %v356_v12 = vsel %vm50_vm2, 1.0, %v462_v2 }
  0x81   :  { %v49_v11 = vpop.permute.xlu0 %48 }
  0x82   :  { %vm51_vm3 = vcmp.eq.s32.totalorder %v43_v9, %v49_v11 }
  0x83   :  { %v357_v13 = vsel %vm51_vm3, 1.0, %v462_v2 }
  0x84   :  { %v56_v15 = vpack.c.bf16 %v357_v13, %v356_v12 }
  0x86   :  { %391 = vmatmul.mubr.msk.bf16.vlgmr.msra.gmra.mxu0 %vm65_vm4, %v56_v15 }
  0x87   :  { %403 = vmatpush3.bf16.msra.mxu0 %v433_v14  ;;  %410 = vmatprep.mubr.msk.bf16.mxu0 %vm463_vm0, %v462_v2 }
  0x88   :  { %404 = vmatprep.subr.bf16.mxu0 %v462_v2 }
  0x8b   :  { %405 = vmatpush3.bf16.msra.mxu0 %v434_v16 }
  0x8c   :  { %406 = vmatprep.subr.bf16.mxu0 %v462_v2 }
  0x8f   :  { %407 = vmatpush3.bf16.msra.mxu0 %v435_v18 }
  0x90   :  { %408 = vmatprep.subr.bf16.mxu0 %v462_v2 }
  0x93   :  { %409 = vmatpush3.bf16.msra.mxu0 %v436_v21 }
  0xca   :  { %v165_v17 = vpop.f32.mrf.mxu1 }
  0xcc   :  { %v400_v19 = vpop.f32.mrf.mxu1 }
  0xce   :  { %v168_v20 = vpop.f32.mrf.mxu1 }
  0xd0   :  { %v401_v22 = vpop.f32.mrf.mxu1 }
 0x146   :  { %v103_v23 = vpop.f32.mrf.mxu0 }
 0x147   :  { %v166_v24 = vadd.f32 %v165_v17, %v103_v23 }
 0x148   :  { %v392_v26 = vpop.f32.mrf.mxu0 }
 0x149   :  { %v179_v28 = vadd.f32 %v364_v25, %v166_v24 }
 0x14a   :  { %v106_v27 = vpop.f32.mrf.mxu0 }
 0x14b   :  { %v169_v29 = vadd.f32 %v168_v20, %v106_v27  ;;  %v181_v32 = vmax.f32 %v179_v28, 0.0 }
 0x14c   :  { %v393_v30 = vpop.f32.mrf.mxu0 }
 0x14d   :  { %v180_v31 = vadd.f32 %v364_v25, %v169_v29 }
 0x14f   :  { %v182_v33 = vmax.f32 %v180_v31, 0.0 }
 0x151   :  { %v183_v34 = vpack.c.bf16 %v182_v33, %v181_v32 }
 0x153   :  { %411 = vmatmul.mubr.msk.bf16.vlgmr.msra.gmra.mxu0 %vm223_vm5, %v183_v34 }
 0x213   :  { %v261_v38 = vpop.f32.mrf.mxu0 }
 0x214   :  { %v262_v40 = vadd.f32 %v365_v37, %v261_v38 }
 0x215   :  { %v412_v39 = vpop.f32.mrf.mxu0 }
 0x216   :  { %v268_v44 = vmax.f32 %v262_v40, 0.0 }
 0x217   :  { %v264_v41 = vpop.f32.mrf.mxu0 }
 0x218   :  { %v265_v42 = vadd.f32 %v365_v37, %v264_v41 }
 0x219   :  { %v413_v43 = vpop.f32.mrf.mxu0 }
 0x21a   :  { %v269_v45 = vmax.f32 %v265_v42, 0.0 }
 0x21c   :  { %v270_v46 = vpack.c.bf16 %v269_v45, %v268_v44 }
 0x21e   :  { %419 = vmatmul.mubr.msk.bf16.vlgmr.msra.gmra.mxu1 %vm127_vm1, %v270_v46 }
 0x2de   :  { %v331_v48 = vpop.f32.mrf.mxu1 }
 0x2df   :  { %v332_v49 = vadd.f32 %v371_v47, %v331_v48 }
 0x2e0   :  { %v420_v50 = vpop.f32.mrf.mxu1 }
 0x2e1   :  { %338 = vst [vmem:[#allocation2] sm:$0xff] %v332_v49 }
 0x2e2   :  { %v334_v51 = vpop.f32.mrf.mxu1 }
 0x2e3   :  { %v335_v52 = vadd.f32 %v371_v47, %v334_v51 }
 0x2e4   :  { %v421_v53 = vpop.f32.mrf.mxu1 }
 0x2e5   :  { %339 = vst [vmem:[#allocation2 + $0x8] sm:$0xff] %v335_v52 }
 0x2e6   :  { %450 = shalt.err (!%p447_p4)
}
 0x2e7   :  { %s465_s13 = smov 128   ;;  %s466_s8 = smov 8  }
 0x2e8   :  { %351 = dma.vmem_to_hbm [thread:$0]  %s346_s12, 256, %s595_s9, [#allocation3], %s465_s13, %s465_s13, %s466_s8  }
 0x2e9   :  { %459 = dma.done.wait [#allocation3], 256  }
 0x2ea   :  { %460 = vsyncadd [#allocation3], 4294967040 }
 0x2eb   :  { %355 = vsyncpa [#allocation3], 1 }

</bundles_post_ra>
